<compile_context>
chip_gen: v7x
topology: tpu7x:2x2x1
jax: 0.10.0
libtpu: 0.0.40
codegen_flags: <defaults>
</compile_context>

<pallas_src>
import jax
import jax.numpy as jnp
from jax.experimental import pallas as pl
from jax.experimental.pallas import tpu as pltpu

LANE = 128
SUBLANE = 8
LOG_CLAMP = -100.0            # matches PyTorch nn.BCELoss log clamping
C_EPSILON = 1e-7              # TODO(synk): stands in for config `c.epsilon` (not given in spec)


def _cdiv(a, b):
    return -(-a // b)


def _round_up(a, b):
    return _cdiv(a, b) * b


def _bce_partial_kernel(hat_ref, true_ref, out_ref):
    """Per-block clamped-BCE partial sums, reduced along sublanes only.

    hat_ref/true_ref : (block_rows, LANE) tiles of the flattened inputs.
    out_ref          : (SUBLANE, LANE) lane-dense partial-sum block for this
                       grid step (cross-lane finish happens in the wrapper).
    """
    x = hat_ref[...].astype(jnp.float32)
    y = true_ref[...].astype(jnp.float32)

    x = jnp.clip(x, 0.0, 1.0)                               # torch.clamp(mask_hat, 0, 1)
    log_x = jnp.maximum(jnp.log(x), LOG_CLAMP)              # EUP log, clamped like BCELoss
    log_1mx = jnp.maximum(jnp.log(1.0 - x), LOG_CLAMP)
    loss = -(y * log_x + (1.0 - y) * log_1mx)               # (block_rows, LANE)

    # Reduce only across groups of 8 sublanes (pure VPU adds); keep the result
    # lane-dense so no XLU cross-lane reduce / SMEM scalar chain per step.
    out_ref[...] = jnp.sum(loss.reshape(-1, SUBLANE, LANE), axis=0)


def mask_loss(mask_hat, mask_true, epsilon=C_EPSILON, *, max_block_rows=2048):
    """Pallas implementation of MaskLoss.forward(mask_hat, mask_true)."""
    if mask_true.ndim == 4:
        mask_true = jnp.squeeze(mask_true, axis=1)
    assert mask_hat.shape == mask_true.shape, (mask_hat.shape, mask_true.shape)

    total = mask_hat.size
    hat_flat = mask_hat.reshape(-1)
    true_flat = mask_true.reshape(-1)

    # Lane-dense 2-D layout + block sizing (block bytes ~1 MiB per input at the
    # cap; double-buffered for two inputs this stays far under the scoped VMEM
    # limit on v5e / v6e / v7x).
    rows = _cdiv(total, LANE)
    max_block_rows = _round_up(max_block_rows, SUBLANE)
    block_rows = min(_round_up(rows, SUBLANE), max_block_rows)
    n_blocks = _cdiv(rows, block_rows)
    padded_elems = n_blocks * block_rows * LANE

    def _pad(flat):
        pad = padded_elems - flat.shape[0]
        if pad == 0:
            return flat
        # hat=1, true=1 padding contributes exactly 0 to the clamped-BCE sum.
        return jnp.concatenate([flat, jnp.ones((pad,), dtype=flat.dtype)])

    hat2 = _pad(hat_flat).reshape(n_blocks * block_rows, LANE)
    true2 = _pad(true_flat).reshape(n_blocks * block_rows, LANE)

    partials = pl.pallas_call(
        _bce_partial_kernel,
        out_shape=jax.ShapeDtypeStruct((SUBLANE, n_blocks * LANE), jnp.float32),
        grid=(n_blocks,),
        in_specs=[
            pl.BlockSpec((block_rows, LANE), lambda j: (j, 0)),
            pl.BlockSpec((block_rows, LANE), lambda j: (j, 0)),
        ],
        out_specs=pl.BlockSpec((SUBLANE, LANE), lambda j: (0, j)),
        compiler_params=pltpu.CompilerParams(
            dimension_semantics=("parallel",),          # no cross-step dependency
            vmem_limit_bytes=32 * 1024 * 1024,
        ),
    )(hat2, true2)

    loss = jnp.sum(partials, dtype=jnp.float32) / jnp.float32(total)
    # `return loss if loss > eps else 0.0 * loss + eps`
    return jnp.where(loss > epsilon, loss, 0.0 * loss + epsilon)


def _reference(mask_hat, mask_true, epsilon=C_EPSILON):
    if mask_true.ndim == 4:
        mask_true = jnp.squeeze(mask_true, axis=1)
    x = jnp.clip(mask_hat.astype(jnp.float32), 0.0, 1.0)
    y = mask_true.astype(jnp.float32)
    log_x = jnp.maximum(jnp.log(x), LOG_CLAMP)
    log_1mx = jnp.maximum(jnp.log(1.0 - x), LOG_CLAMP)
    loss = jnp.mean(-(y * log_x + (1.0 - y) * log_1mx))
    return jnp.where(loss > epsilon, loss, 0.0 * loss + epsilon)


if __name__ == "__main__":
    key = jax.random.PRNGKey(0)
    k_hat, k_true = jax.random.split(key)

    B, H, W = 2, 16, 16
    # Predictions slightly outside [0, 1] to exercise the clamp (and the -100
    # log clamp at the boundaries), ground truth as a binary 4-D mask (B,1,H,W)
    # to exercise the squeeze branch.
    mask_hat = jax.random.uniform(k_hat, (B, H, W), dtype=jnp.float32,
                                  minval=-0.05, maxval=1.05)
    mask_true = (jax.random.uniform(k_true, (B, 1, H, W)) > 0.5).astype(jnp.float32)

    loss = mask_loss(mask_hat, mask_true)
    jax.block_until_ready(loss)

    loss_ref = _reference(mask_hat, mask_true)
    assert jnp.allclose(loss, loss_ref, rtol=1e-5, atol=1e-5), (loss, loss_ref)

    # Epsilon-floor branch: a perfect prediction gives ~0 loss -> floor applies.
    perfect = mask_loss(jnp.squeeze(mask_true, 1), mask_true)
    jax.block_until_ready(perfect)
    assert jnp.allclose(perfect, _reference(jnp.squeeze(mask_true, 1), mask_true),
                        rtol=1e-5, atol=1e-7), perfect

    print("KERNEL_OK")
</pallas_src>

<mosaic_0001>
module attributes {stable_mosaic.version = 11 : i64} {
  func.func @_bce_partial_kernel(%arg0: i32, %arg1: memref<8x128xf32, #tpu.memory_space<vmem>>, %arg2: memref<8x128xf32, #tpu.memory_space<vmem>>, %arg3: memref<8x128xf32, #tpu.memory_space<vmem>>) attributes {dimension_semantics = [#tpu.dimension_semantics<parallel>], iteration_bounds = array<i64: 1>, scalar_prefetch = 0 : i64, scratch_operands = 0 : i64, tpu.core_type = #tpu.core_type<tc>, window_params = [{transform_indices = @transform_0, window_bounds = array<i64: 8, 128>}, {transform_indices = @transform_1, window_bounds = array<i64: 8, 128>}, {transform_indices = @transform_2, window_bounds = array<i64: 8, 128>}]} {
    %c0 = arith.constant 0 : index
    %c0_0 = arith.constant 0 : index
    %0 = vector.load %arg1[%c0, %c0_0] : memref<8x128xf32, #tpu.memory_space<vmem>>, vector<8x128xf32>
    %c0_1 = arith.constant 0 : index
    %c0_2 = arith.constant 0 : index
    %1 = vector.load %arg2[%c0_1, %c0_2] : memref<8x128xf32, #tpu.memory_space<vmem>>, vector<8x128xf32>
    %cst = arith.constant 0.000000e+00 : f32
    %cst_3 = arith.constant 1.000000e+00 : f32
    %2 = vector.broadcast %cst : f32 to vector<8x128xf32>
    %3 = arith.maximumf %2, %0 : vector<8x128xf32>
    %4 = vector.broadcast %cst_3 : f32 to vector<8x128xf32>
    %5 = arith.minimumf %4, %3 : vector<8x128xf32>
    %6 = math.log %5 : vector<8x128xf32>
    %cst_4 = arith.constant -1.000000e+02 : f32
    %7 = vector.broadcast %cst_4 : f32 to vector<8x128xf32>
    %8 = arith.maximumf %6, %7 : vector<8x128xf32>
    %cst_5 = arith.constant 1.000000e+00 : f32
    %9 = vector.broadcast %cst_5 : f32 to vector<8x128xf32>
    %10 = arith.subf %9, %5 : vector<8x128xf32>
    %11 = math.log %10 : vector<8x128xf32>
    %cst_6 = arith.constant -1.000000e+02 : f32
    %12 = vector.broadcast %cst_6 : f32 to vector<8x128xf32>
    %13 = arith.maximumf %11, %12 : vector<8x128xf32>
    %14 = arith.mulf %1, %8 : vector<8x128xf32>
    %cst_7 = arith.constant 1.000000e+00 : f32
    %15 = vector.broadcast %cst_7 : f32 to vector<8x128xf32>
    %16 = arith.subf %15, %1 : vector<8x128xf32>
    %17 = arith.mulf %16, %13 : vector<8x128xf32>
    %18 = arith.addf %14, %17 : vector<8x128xf32>
    %cst_8 = arith.constant 0.000000e+00 : f32
    %19 = vector.broadcast %cst_8 : f32 to vector<8x128xf32>
    %20 = arith.subf %19, %18 : vector<8x128xf32>
    %21 = vector.shape_cast %20 : vector<8x128xf32> to vector<1x8x128xf32>
    %cst_9 = arith.constant dense<0.000000e+00> : vector<8x128xf32>
    %22 = vector.multi_reduction <add>, %21, %cst_9 [0] : vector<1x8x128xf32> to vector<8x128xf32>
    %c0_10 = arith.constant 0 : index
    %c0_11 = arith.constant 0 : index
    %23 = vector.load %arg3[%c0_10, %c0_11] : memref<8x128xf32, #tpu.memory_space<vmem>>, vector<8x128xf32>
    tpu.vector_store %arg3[%c0_10, %c0_11], %22 {strides = array<i32>} : memref<8x128xf32, #tpu.memory_space<vmem>>, vector<8x128xf32>,
    return
  }
  func.func @transform_0(%arg0: i32) -> (i32, i32) {
    %c0_i32 = arith.constant 0 : i32
    %c0_i32_0 = arith.constant 0 : i32
    return %arg0, %c0_i32 : i32, i32
  }
  func.func @transform_1(%arg0: i32) -> (i32, i32) {
    %c0_i32 = arith.constant 0 : i32
    %c0_i32_0 = arith.constant 0 : i32
    return %arg0, %c0_i32 : i32, i32
  }
  func.func @transform_2(%arg0: i32) -> (i32, i32) {
    %c0_i32 = arith.constant 0 : i32
    %c0_i32_0 = arith.constant 0 : i32
    return %c0_i32, %arg0 : i32, i32
  }
}

</mosaic_0001>

<bundles_post_ra>
// kernel: tpu_custom_call.1
= control target key start
LH: loop header
LB: loop body
LE: loop exit
PB: predicated region body
PF: predicated region fallthrough
CT: control target
= control target key end

     0   :  { %7 = vsyncpa [#allocation3], 0  ;;  %s203_s0 = inlined_call_operand.hbm [shape: f32[8,128], index: 0, kind: input, shape index: {}]   ;;  %s204_s1 = inlined_call_operand.hbm [shape: f32[8,128], index: 1, kind: input, shape index: {}]   ;;  %s205_s2 = inlined_call_operand.hbm [shape: f32[8,128], index: 2, kind: output, shape index: {}]  }
   0x1   :  { %8 = vsyncpa [#allocation6], 0 }
   0x2   :  { %9 = vsyncpa [#allocation4], 0  ;;  %s149_s9 = smov [#allocation2]   ;;  %s150_s11 = smov [#allocation5]  }
   0x3   :  { %s16_s10 = sshll.u32 %s149_s9, 4  ;;  %s26_s12 = sshll.u32 %s150_s11, 4  ;;  %s17_s10 = int_to_ptr.vmem [resolvable:$true] %s16_s10  ;;  %s27_s12 = int_to_ptr.vmem [resolvable:$true] %s26_s12 }
   0x4   :  { %s77_s15 = scalar_lea.hbm %s203_s0, 128 }
   0x5   :  { %p78_p0 = scmp.ne.s32.totalorder %s203_s0, %s77_s15  ;;  %p81_p1 = scmp.lt.u32.totalorder %s77_s15, %s203_s0 }
   0x7   :  { %p83_p2 = pnand %p81_p1, %p78_p0 }
   0x9   :  { %86 = shalt.err (!%p83_p2)
}
   0xa   :  { %s87_s20 = scalar_lea.vmem %s17_s10, 128  ;;  %p92_p4 = scmp.lt.s32.totalorder %s17_s10, %s17_s10 }
   0xb   :  { %p88_p3 = scmp.ne.s32.totalorder %s17_s10, %s87_s20  ;;  %p93_p5 = scmp.lt.s32.totalorder %s87_s20, %s87_s20 }
   0xd   :  { %p94_p6 = por %p93_p5, %p92_p4 }
   0xf   :  { %p95_p7 = pnand %p94_p6, %p88_p3 }
  0x11   :  { %98 = shalt.err (!%p95_p7)
}
  0x12   :  { %19 = dma.hbm_to_vmem [thread:$0]  %s203_s0, 128, %s17_s10, [#allocation3]  }
  0x13   :  { %s99_s25 = scalar_lea.hbm %s204_s1, 128 }
  0x14   :  { %p100_p8 = scmp.ne.s32.totalorder %s204_s1, %s99_s25  ;;  %p103_p9 = scmp.lt.u32.totalorder %s99_s25, %s204_s1 }
  0x16   :  { %p105_p10 = pnand %p103_p9, %p100_p8 }
  0x18   :  { %108 = shalt.err (!%p105_p10)
}
  0x19   :  { %s109_s30 = scalar_lea.vmem %s27_s12, 128  ;;  %p114_p12 = scmp.lt.s32.totalorder %s27_s12, %s27_s12 }
  0x1a   :  { %p110_p11 = scmp.ne.s32.totalorder %s27_s12, %s109_s30  ;;  %p115_p13 = scmp.lt.s32.totalorder %s109_s30, %s109_s30 }
  0x1c   :  { %p116_p0 = por %p115_p13, %p114_p12 }
  0x1e   :  { %p117_p1 = pnand %p116_p0, %p110_p11 }
  0x20   :  { %120 = shalt.err (!%p117_p1)
}
  0x21   :  { %29 = dma.hbm_to_vmem [thread:$0]  %s204_s1, 128, %s27_s12, [#allocation6]  }
  0x22   :  { %143 = dma.done.wait [#allocation3], 128  }
  0x23   :  { %144 = vsyncadd [#allocation3], 4294967168 }
  0x24   :  { %145 = dma.done.wait [#allocation6], 128  }
  0x25   :  { %146 = vsyncadd [#allocation6], 4294967168  ;;  %v36_v0 = vld [vmem:[#allocation2] sm:$0xff]  ;;  %v37_v5 = vld [vmem:[#allocation5] sm:$0xff]  ;;  %s151_s1 = smov [#allocation7]  }
  0x26   :  { %v38_v1 = vmax.f32 %v36_v0, 0.0  ;;  %v48_v10 = vsub.f32 1.0, %v37_v5  ;;  %s60_s4 = sshll.u32 %s151_s1, 4  ;;  %s61_s4 = int_to_ptr.vmem [resolvable:$true] %s60_s4 }
  0x27   :  { %s121_s5 = scalar_lea.vmem %s61_s4, 128  ;;  %p126_p3 = scmp.lt.s32.totalorder %s61_s4, %s61_s4 }
  0x28   :  { %v39_v2 = vmin.f32 %v38_v1, 1.0  ;;  %p122_p2 = scmp.ne.s32.totalorder %s61_s4, %s121_s5  ;;  %p127_p4 = scmp.lt.s32.totalorder %s121_s5, %s121_s5 }
  0x2a   :  { %73 = vlog2.f32 %v39_v2  ;;  %v43_v3 = vsub.f32 1.0, %v39_v2  ;;  %p128_p5 = por %p127_p4, %p126_p3 }
  0x2c   :  { %75 = vlog2.f32 %v43_v3  ;;  %p129_p6 = pnand %p128_p5, %p122_p2 }
  0x34   :  { %v74_v4 = vpop.eup %73 }
  0x35   :  { %v41_v6 = vmul.f32 0.6931472, %v74_v4 }
  0x36   :  { %v76_v7 = vpop.eup %75 }
  0x37   :  { %v42_v8 = vmax.f32 %v41_v6, -100.0  ;;  %v45_v9 = vmul.f32 0.6931472, %v76_v7 }
  0x39   :  { %v46_v11 = vmax.f32 %v45_v9, -100.0  ;;  %v47_v12 = vmul.f32 %v42_v8, %v37_v5 }
  0x3b   :  { %v49_v13 = vmul.f32 %v48_v10, %v46_v11 }
  0x3d   :  { %v50_v14 = vadd.f32 %v49_v13, %v47_v12 }
  0x3f   :  { %v51_v15 = vsub.f32 0.0, %v50_v14 }
  0x41   :  { %53 = vst [vmem:[#allocation7] sm:$0xff] %v51_v15 }
  0x42   :  { %132 = shalt.err (!%p129_p6)
}
  0x43   :  { %s133_s8 = scalar_lea.hbm %s205_s2, 128 }
  0x44   :  { %p134_p7 = scmp.ne.s32.totalorder %s205_s2, %s133_s8  ;;  %p137_p8 = scmp.lt.u32.totalorder %s133_s8, %s205_s2 }
  0x46   :  { %p139_p9 = pnand %p137_p8, %p134_p7 }
  0x48   :  { %142 = shalt.err (!%p139_p9)
}
  0x49   :  { %63 = dma.vmem_to_hbm [thread:$0]  %s61_s4, 128, %s205_s2, [#allocation4]  }
  0x4a   :  { %147 = dma.done.wait [#allocation4], 128  }
  0x4b   :  { %148 = vsyncadd [#allocation4], 4294967168 }
  0x4c   :  { %67 = vsyncpa [#allocation3], 1 }
  0x4d   :  { %68 = vsyncpa [#allocation6], 1 }
  0x4e   :  { %69 = vsyncpa [#allocation4], 1 }

</bundles_post_ra>
